<compile_context>
chip_gen: v7x
topology: tpu7x:2x2x1
jax: 0.10.0
libtpu: 0.0.40
codegen_flags: <defaults>
</compile_context>

<pallas_src>
import functools

import jax
import jax.numpy as jnp
from jax.experimental import pallas as pl
from jax.experimental.pallas import tpu as pltpu


def _round_up(x, m):
    return ((x + m - 1) // m) * m


def _actor_kernel(obs_ref, w1_ref, b1_ref, w2_ref, b2_ref, w3_ref, b3_ref,
                  out_ref, *, act_limit):
    x = obs_ref[...]
    if x.dtype != jnp.float32:            # static (trace-time) check
        x = x.astype(jnp.float32)

    # Layer 1: Linear(obs_dim, 64) + ReLU
    h1 = jnp.dot(x, w1_ref[...], preferred_element_type=jnp.float32) + b1_ref[...]
    h1 = jnp.maximum(h1, 0.0)

    # Layer 2: Linear(64, 64) + ReLU
    h2 = jnp.dot(h1, w2_ref[...], preferred_element_type=jnp.float32) + b2_ref[...]
    h2 = jnp.maximum(h2, 0.0)

    # Layer 3: Linear(64, act_dim) + Tanh, then (optional) act_limit scale
    h3 = jnp.dot(h2, w3_ref[...], preferred_element_type=jnp.float32) + b3_ref[...]
    y = jnp.tanh(h3)                      # EUP slot — effectively free
    if act_limit != 1.0:                  # static: skip the vmul when limit is 1
        y = act_limit * y
    out_ref[...] = y.astype(out_ref.dtype)


# Cap keeps worst-case live activations (~3 * bb * 64 * 4 B) + double-buffered
# obs/out tiles well under the default scoped VMEM limit on v5e/v6e/v7x.
_MAX_BLOCK_BATCH = 4096


def actor_forward(obs, params, act_limit, *, block_batch=512):
    """Pallas forward pass of the Actor MLP.

    obs: (B, obs_dim) float32
    params: dict with w1(obs_dim,64) b1(1,64) w2(64,64) b2(1,64)
            w3(64,act_dim) b3(1,act_dim)
    block_batch: rows per grid step (primary tuning knob). Rounded to a
        multiple of 128 for MXU M-fill; batches smaller than one tile run as
        a single (8-row-padded) tile.
    """
    w1, b1 = params["w1"], params["b1"]
    w2, b2 = params["w2"], params["b2"]
    w3, b3 = params["w3"], params["b3"]

    B, obs_dim = obs.shape
    hidden = w1.shape[1]
    act_dim = w3.shape[1]

    block_batch = min(int(block_batch), _MAX_BLOCK_BATCH)
    if B <= block_batch:
        # One tile for the whole batch; sublane (8) alignment is enough.
        bb = _round_up(B, 8)
    else:
        # Multi-block grid: keep tiles a multiple of 128 to fill the MXU M dim.
        bb = min(_round_up(block_batch, 128), _MAX_BLOCK_BATCH)

    Bp = _round_up(B, bb)
    if Bp != B:
        obs = jnp.pad(obs, ((0, Bp - B), (0, 0)))

    grid = (Bp // bb,)
    kernel = functools.partial(_actor_kernel, act_limit=float(act_limit))

    out = pl.pallas_call(
        kernel,
        out_shape=jax.ShapeDtypeStruct((Bp, act_dim), jnp.float32),
        grid_spec=pltpu.PrefetchScalarGridSpec(
            num_scalar_prefetch=0,
            grid=grid,
            in_specs=[
                # batch-tiled activations
                pl.BlockSpec((bb, obs_dim), lambda i: (i, 0)),
                # weights / biases: full blocks, grid-invariant (no re-DMA)
                pl.BlockSpec((obs_dim, hidden), lambda i: (0, 0)),
                pl.BlockSpec((1, hidden), lambda i: (0, 0)),
                pl.BlockSpec((hidden, hidden), lambda i: (0, 0)),
                pl.BlockSpec((1, hidden), lambda i: (0, 0)),
                pl.BlockSpec((hidden, act_dim), lambda i: (0, 0)),
                pl.BlockSpec((1, act_dim), lambda i: (0, 0)),
            ],
            out_specs=pl.BlockSpec((bb, act_dim), lambda i: (i, 0)),
        ),
        compiler_params=pltpu.CompilerParams(
            dimension_semantics=("parallel",)),
    )(obs, w1, b1, w2, b2, w3, b3)

    return out[:B]


def init_params(key, obs_dim, hidden, act_dim):
    """Deterministic synthetic init (PyTorch-Linear-like uniform bounds)."""
    ks = jax.random.split(key, 6)

    def linear(kw, kb, fan_in, fan_out):
        bound = 1.0 / jnp.sqrt(fan_in)
        w = jax.random.uniform(kw, (fan_in, fan_out), jnp.float32, -bound, bound)
        b = jax.random.uniform(kb, (1, fan_out), jnp.float32, -bound, bound)
        return w, b

    w1, b1 = linear(ks[0], ks[1], obs_dim, hidden)
    w2, b2 = linear(ks[2], ks[3], hidden, hidden)
    w3, b3 = linear(ks[4], ks[5], hidden, act_dim)
    return {"w1": w1, "b1": b1, "w2": w2, "b2": b2, "w3": w3, "b3": b3}


def actor_reference(obs, params, act_limit):
    h1 = jnp.maximum(obs @ params["w1"] + params["b1"], 0.0)
    h2 = jnp.maximum(h1 @ params["w2"] + params["b2"], 0.0)
    return act_limit * jnp.tanh(h2 @ params["w3"] + params["b3"])


if __name__ == "__main__":
    # FetchReachDense-v2: observation dim = 10, action dim = 4, act_limit = 1.0
    OBS_DIM, ACT_DIM, HIDDEN = 10, 4, 64
    ACT_LIMIT = 1.0
    BATCH = 300   # realistic RL minibatch; NOT a multiple of the tile size

    key = jax.random.PRNGKey(0)
    k_obs, k_params = jax.random.split(key)

    obs = jax.random.normal(k_obs, (BATCH, OBS_DIM), dtype=jnp.float32)
    params = init_params(k_params, OBS_DIM, HIDDEN, ACT_DIM)
    ref = actor_reference(obs, params, ACT_LIMIT)

    # Single-tile path (whole batch in one grid step).
    out = jax.block_until_ready(actor_forward(obs, params, ACT_LIMIT))
    assert out.shape == (BATCH, ACT_DIM)
    assert jnp.allclose(out, ref, atol=1e-5, rtol=1e-5), "mismatch (single tile)"

    # Multi-block path (128-row tiles, padded grid, parallel batch axis).
    out2 = jax.block_until_ready(
        actor_forward(obs, params, ACT_LIMIT, block_batch=128))
    assert out2.shape == (BATCH, ACT_DIM)
    assert jnp.allclose(out2, ref, atol=1e-5, rtol=1e-5), "mismatch (multi tile)"

    # Tiny-batch path (inference-style, 2 observations).
    obs_small = obs[:2]
    out3 = jax.block_until_ready(actor_forward(obs_small, params, ACT_LIMIT))
    assert out3.shape == (2, ACT_DIM)
    assert jnp.allclose(out3, ref[:2], atol=1e-5, rtol=1e-5), "mismatch (tiny)"

    print("KERNEL_OK")
</pallas_src>

<mosaic_0001>
module attributes {stable_mosaic.version = 11 : i64} {
  func.func @_actor_kernel(%arg0: i32, %arg1: memref<304x10xf32, #tpu.memory_space<vmem>>, %arg2: memref<10x64xf32, #tpu.memory_space<vmem>>, %arg3: memref<1x64xf32, #tpu.memory_space<vmem>>, %arg4: memref<64x64xf32, #tpu.memory_space<vmem>>, %arg5: memref<1x64xf32, #tpu.memory_space<vmem>>, %arg6: memref<64x4xf32, #tpu.memory_space<vmem>>, %arg7: memref<1x4xf32, #tpu.memory_space<vmem>>, %arg8: memref<304x4xf32, #tpu.memory_space<vmem>>) attributes {dimension_semantics = [#tpu.dimension_semantics<parallel>], iteration_bounds = array<i64: 1>, scalar_prefetch = 0 : i64, scratch_operands = 0 : i64, tpu.core_type = #tpu.core_type<tc>, window_params = [{transform_indices = @transform_0, window_bounds = array<i64: 304, 10>}, {pipeline_mode = #tpu.pipeline_mode<synchronous>, transform_indices = @transform_1, window_bounds = array<i64: 10, 64>}, {pipeline_mode = #tpu.pipeline_mode<synchronous>, transform_indices = @transform_2, window_bounds = array<i64: 1, 64>}, {pipeline_mode = #tpu.pipeline_mode<synchronous>, transform_indices = @transform_3, window_bounds = array<i64: 64, 64>}, {pipeline_mode = #tpu.pipeline_mode<synchronous>, transform_indices = @transform_4, window_bounds = array<i64: 1, 64>}, {pipeline_mode = #tpu.pipeline_mode<synchronous>, transform_indices = @transform_5, window_bounds = array<i64: 64, 4>}, {pipeline_mode = #tpu.pipeline_mode<synchronous>, transform_indices = @transform_6, window_bounds = array<i64: 1, 4>}, {transform_indices = @transform_7, window_bounds = array<i64: 304, 4>}]} {
    %c0 = arith.constant 0 : index
    %c0_0 = arith.constant 0 : index
    %0 = vector.load %arg1[%c0, %c0_0] : memref<304x10xf32, #tpu.memory_space<vmem>>, vector<304x10xf32>
    %c0_1 = arith.constant 0 : index
    %c0_2 = arith.constant 0 : index
    %1 = vector.load %arg2[%c0_1, %c0_2] : memref<10x64xf32, #tpu.memory_space<vmem>>, vector<10x64xf32>
    %cst = arith.constant dense<0.000000e+00> : vector<304x64xf32>
    %2 = tpu.matmul %0, %1, %cst {dimension_numbers = #tpu.dot_dimension_numbers<[1], [0], [0], [1], [0, 0, 1, 1], [], []>} : vector<304x10xf32>, vector<10x64xf32>, vector<304x64xf32> -> vector<304x64xf32>
    %c0_3 = arith.constant 0 : index
    %c0_4 = arith.constant 0 : index
    %3 = vector.load %arg3[%c0_3, %c0_4] : memref<1x64xf32, #tpu.memory_space<vmem>>, vector<1x64xf32>
    %4 = vector.broadcast %3 : vector<1x64xf32> to vector<304x64xf32>
    %5 = arith.addf %2, %4 : vector<304x64xf32>
    %cst_5 = arith.constant 0.000000e+00 : f32
    %6 = vector.broadcast %cst_5 : f32 to vector<304x64xf32>
    %7 = arith.maximumf %5, %6 : vector<304x64xf32>
    %c0_6 = arith.constant 0 : index
    %c0_7 = arith.constant 0 : index
    %8 = vector.load %arg4[%c0_6, %c0_7] : memref<64x64xf32, #tpu.memory_space<vmem>>, vector<64x64xf32>
    %cst_8 = arith.constant dense<0.000000e+00> : vector<304x64xf32>
    %9 = tpu.matmul %7, %8, %cst_8 {dimension_numbers = #tpu.dot_dimension_numbers<[1], [0], [0], [1], [0, 0, 1, 1], [], []>} : vector<304x64xf32>, vector<64x64xf32>, vector<304x64xf32> -> vector<304x64xf32>
    %c0_9 = arith.constant 0 : index
    %c0_10 = arith.constant 0 : index
    %10 = vector.load %arg5[%c0_9, %c0_10] : memref<1x64xf32, #tpu.memory_space<vmem>>, vector<1x64xf32>
    %11 = vector.broadcast %10 : vector<1x64xf32> to vector<304x64xf32>
    %12 = arith.addf %9, %11 : vector<304x64xf32>
    %cst_11 = arith.constant 0.000000e+00 : f32
    %13 = vector.broadcast %cst_11 : f32 to vector<304x64xf32>
    %14 = arith.maximumf %12, %13 : vector<304x64xf32>
    %c0_12 = arith.constant 0 : index
    %c0_13 = arith.constant 0 : index
    %15 = vector.load %arg6[%c0_12, %c0_13] : memref<64x4xf32, #tpu.memory_space<vmem>>, vector<64x4xf32>
    %cst_14 = arith.constant dense<0.000000e+00> : vector<304x4xf32>
    %16 = tpu.matmul %14, %15, %cst_14 {dimension_numbers = #tpu.dot_dimension_numbers<[1], [0], [0], [1], [0, 0, 1, 1], [], []>} : vector<304x64xf32>, vector<64x4xf32>, vector<304x4xf32> -> vector<304x4xf32>
    %c0_15 = arith.constant 0 : index
    %c0_16 = arith.constant 0 : index
    %17 = vector.load %arg7[%c0_15, %c0_16] : memref<1x4xf32, #tpu.memory_space<vmem>>, vector<1x4xf32>
    %18 = vector.broadcast %17 : vector<1x4xf32> to vector<304x4xf32>
    %19 = arith.addf %16, %18 : vector<304x4xf32>
    %20 = math.tanh %19 : vector<304x4xf32>
    %c0_17 = arith.constant 0 : index
    %c0_18 = arith.constant 0 : index
    %21 = vector.load %arg8[%c0_17, %c0_18] : memref<304x4xf32, #tpu.memory_space<vmem>>, vector<304x4xf32>
    tpu.vector_store %arg8[%c0_17, %c0_18], %20 {strides = array<i32>} : memref<304x4xf32, #tpu.memory_space<vmem>>, vector<304x4xf32>,
    return
  }
  func.func @transform_0(%arg0: i32) -> (i32, i32) {
    %c0_i32 = arith.constant 0 : i32
    %c0_i32_0 = arith.constant 0 : i32
    return %arg0, %c0_i32 : i32, i32
  }
  func.func @transform_1(%arg0: i32) -> (i32, i32) {
    %c0_i32 = arith.constant 0 : i32
    %c0_i32_0 = arith.constant 0 : i32
    %c0_i32_1 = arith.constant 0 : i32
    return %c0_i32, %c0_i32_0 : i32, i32
  }
  func.func @transform_2(%arg0: i32) -> (i32, i32) {
    %c0_i32 = arith.constant 0 : i32
    %c0_i32_0 = arith.constant 0 : i32
    %c0_i32_1 = arith.constant 0 : i32
    return %c0_i32, %c0_i32_0 : i32, i32
  }
  func.func @transform_3(%arg0: i32) -> (i32, i32) {
    %c0_i32 = arith.constant 0 : i32
    %c0_i32_0 = arith.constant 0 : i32
    %c0_i32_1 = arith.constant 0 : i32
    return %c0_i32, %c0_i32_0 : i32, i32
  }
  func.func @transform_4(%arg0: i32) -> (i32, i32) {
    %c0_i32 = arith.constant 0 : i32
    %c0_i32_0 = arith.constant 0 : i32
    %c0_i32_1 = arith.constant 0 : i32
    return %c0_i32, %c0_i32_0 : i32, i32
  }
  func.func @transform_5(%arg0: i32) -> (i32, i32) {
    %c0_i32 = arith.constant 0 : i32
    %c0_i32_0 = arith.constant 0 : i32
    %c0_i32_1 = arith.constant 0 : i32
    return %c0_i32, %c0_i32_0 : i32, i32
  }
  func.func @transform_6(%arg0: i32) -> (i32, i32) {
    %c0_i32 = arith.constant 0 : i32
    %c0_i32_0 = arith.constant 0 : i32
    %c0_i32_1 = arith.constant 0 : i32
    return %c0_i32, %c0_i32_0 : i32, i32
  }
  func.func @transform_7(%arg0: i32) -> (i32, i32) {
    %c0_i32 = arith.constant 0 : i32
    %c0_i32_0 = arith.constant 0 : i32
    return %arg0, %c0_i32 : i32, i32
  }
}

</mosaic_0001>

<bundles_post_ra>
// kernel: tpu_custom_call.1
= control target key start
LH: loop header
LB: loop body
LE: loop exit
PB: predicated region body
PF: predicated region fallthrough
CT: control target
= control target key end

     0   :  { %vm188_vm0 = vcmask 1041408   ;;  %vm73_vm1 = vcmask 80896   ;;  %vm1947_vm2 = vmmov 1   ;;  %vm500_vm4 = vcmask 523264   ;;  %s2602_s1 = inlined_call_operand.vmem [shape: f32[10,64], index: 1, kind: input, shape index: {}]   ;;  %s2603_s0 = inlined_call_operand.vmem [shape: f32[304,10], index: 0, kind: input, shape index: {}]   ;;  %s2604_s3 = inlined_call_operand.vmem [shape: f32[64,64], index: 3, kind: input, shape index: {}]   ;;  %s2605_s5 = inlined_call_operand.vmem [shape: f32[64,4], index: 5, kind: input, shape index: {}]   ;;  %s2606_s2 = inlined_call_operand.vmem [shape: f32[1,64], index: 2, kind: input, shape index: {}]   ;;  %s2607_s4 = inlined_call_operand.vmem [shape: f32[1,64], index: 4, kind: input, shape index: {}]   ;;  %s2608_s6 = inlined_call_operand.vmem [shape: f32[1,4], index: 6, kind: input, shape index: {}]   ;;  %s2609_s7 = inlined_call_operand.vmem [shape: f32[304,4], index: 7, kind: output, shape index: {}]  }
   0x1   :  { %v64_v0 = vld [vmem:[%s2602_s1] sm:$0xff]  ;;  %v65_v1 = vld [vmem:[%s2602_s1 + $0x8] sm:$0x3]  ;;  %vm1831_vm3 = vmpackc.low %vm188_vm0, %vm1947_vm2  ;;  %vm1330_vm5 = vcmask 31744  }
   0x2   :  { %v1830_v2 = vpack.c.bf16 %v65_v1, %v64_v0  ;;  %v26_v3 = vld [vmem:[%s2603_s0] sm:$0xff]  ;;  %v27_v4 = vld [vmem:[%s2603_s0 + $0x8] sm:$0xff]  ;;  %v28_v5 = vld [vmem:[%s2603_s0 + $0x10] sm:$0xff] }
   0x3   :  { %1627 = vmatprep.mubr.msk.f32.mxu0 %vm73_vm1, %v26_v3  ;;  %v46_v6 = vld [vmem:[%s2603_s0 + $0xa0] sm:$0xff]  ;;  %v29_v7 = vld [vmem:[%s2603_s0 + $0x18] sm:$0xff]  ;;  %v47_v8 = vld [vmem:[%s2603_s0 + $0xa8] sm:$0xff] }
   0x4   :  { %1832 = vmatprep.subr.msk.bf16.mxu0 %vm1831_vm3, %v1830_v2  ;;  %1868 = vmatprep.subr.msk.bf16.mxu1 %vm1831_vm3, %v1830_v2  ;;  %v48_v9 = vld [vmem:[%s2603_s0 + $0xb0] sm:$0xff]  ;;  %v30_v10 = vld [vmem:[%s2603_s0 + $0x20] sm:$0xff]  ;;  %v49_v11 = vld [vmem:[%s2603_s0 + $0xb8] sm:$0xff] }
   0x5   :  { %1835 = vmatpush3.bf16.msk.msra.mxu0 %vm1831_vm3, %v1830_v2  ;;  %1869 = vmatpush3.bf16.msk.msra.mxu1 %vm1831_vm3, %v1830_v2  ;;  %v50_v12 = vld [vmem:[%s2603_s0 + $0xc0] sm:$0xff]  ;;  %v31_v13 = vld [vmem:[%s2603_s0 + $0x28] sm:$0xff]  ;;  %v32_v14 = vld [vmem:[%s2603_s0 + $0x30] sm:$0xff] }
   0x6   :  { %1657 = vmatprep.mubr.msk.f32.mxu1 %vm73_vm1, %v46_v6  ;;  %v51_v15 = vld [vmem:[%s2603_s0 + $0xc8] sm:$0xff]  ;;  %v485_v16 = vld [vmem:[%s2604_s3] sm:$0xff]  ;;  %v487_v18 = vld [vmem:[%s2604_s3 + $0x10] sm:$0xff] }
   0x7   :  { %v486_v17 = vld [vmem:[%s2604_s3 + $0x8] sm:$0xff]  ;;  %v488_v19 = vld [vmem:[%s2604_s3 + $0x18] sm:$0xff]  ;;  %v52_v20 = vld [vmem:[%s2603_s0 + $0xd0] sm:$0xff] }
   0x8   :  { %1628 = vmatmul.mubr.msk.f32.vlgmr.msra.gmra.mrb[0].mxu0 %vm73_vm1, %v27_v4  ;;  %1658 = vmatmul.mubr.msk.f32.vlgmr.msra.gmra.mrb[0].mxu1 %vm73_vm1, %v47_v8  ;;  %v1836_v21 = vpack.c.bf16 %v486_v17, %v485_v16  ;;  %v1840_v22 = vpack.c.bf16 %v488_v19, %v487_v18  ;;  %v33_v23 = vld [vmem:[%s2603_s0 + $0x38] sm:$0xff]  ;;  %v489_v24 = vld [vmem:[%s2604_s3 + $0x20] sm:$0xff]  ;;  %v490_v25 = vld [vmem:[%s2604_s3 + $0x28] sm:$0xff] }
   0x9   :  { %1630 = vmatprep.mubr.msk.f32.mxu0 %vm73_vm1, %v28_v5  ;;  %1660 = vmatprep.mubr.msk.f32.mxu1 %vm73_vm1, %v48_v9  ;;  %v34_v26 = vld [vmem:[%s2603_s0 + $0x40] sm:$0xff]  ;;  %v53_v27 = vld [vmem:[%s2603_s0 + $0xd8] sm:$0xff]  ;;  %v1844_v29 = vpack.c.bf16 %v490_v25, %v489_v24  ;;  %v35_v30 = vld [vmem:[%s2603_s0 + $0x48] sm:$0xff] }
   0xa   :  { %1837 = vmatprep.subr.bf16.mxu1 %v1836_v21  ;;  %v54_v28 = vld [vmem:[%s2603_s0 + $0xe0] sm:$0xff]  ;;  %v491_v31 = vld [vmem:[%s2604_s3 + $0x30] sm:$0xff]  ;;  %v492_v32 = vld [vmem:[%s2604_s3 + $0x38] sm:$0xff] }
   0xb   :  { %1839 = vmatpush3.bf16.msra.mxu1 %v1836_v21  ;;  %v36_v33 = vld [vmem:[%s2603_s0 + $0x50] sm:$0xff]  ;;  %v55_v34 = vld [vmem:[%s2603_s0 + $0xe8] sm:$0xff]  ;;  %v1848_v36 = vpack.c.bf16 %v492_v32, %v491_v31  ;;  %v37_v37 = vld [vmem:[%s2603_s0 + $0x58] sm:$0xff] }
   0xc   :  { %1631 = vmatmul.mubr.msk.f32.gmra.mrb[2].mxu0 %vm73_vm1, %v29_v7  ;;  %1661 = vmatmul.mubr.msk.f32.gmra.mrb[2].mxu1 %vm73_vm1, %v49_v11  ;;  %v56_v35 = vld [vmem:[%s2603_s0 + $0xf0] sm:$0xff]  ;;  %v38_v38 = vld [vmem:[%s2603_s0 + $0x60] sm:$0xff]  ;;  %v57_v39 = vld [vmem:[%s2603_s0 + $0xf8] sm:$0xff] }
   0xd   :  { %1633 = vmatprep.mubr.msk.f32.mxu0 %vm73_vm1, %v30_v10  ;;  %1663 = vmatprep.mubr.msk.f32.mxu1 %vm73_vm1, %v50_v12  ;;  %v58_v40 = vld [vmem:[%s2603_s0 + $0x100] sm:$0xff]  ;;  %v39_v41 = vld [vmem:[%s2603_s0 + $0x68] sm:$0xff]  ;;  %v40_v42 = vld [vmem:[%s2603_s0 + $0x70] sm:$0xff] }
   0xe   :  { %1841 = vmatprep.subr.bf16.mxu1 %v1840_v22  ;;  %v59_v43 = vld [vmem:[%s2603_s0 + $0x108] sm:$0xff]  ;;  %v60_v44 = vld [vmem:[%s2603_s0 + $0x110] sm:$0xff]  ;;  %v41_v45 = vld [vmem:[%s2603_s0 + $0x78] sm:$0xff] }
   0xf   :  { %1843 = vmatpush3.bf16.msra.mxu1 %v1840_v22  ;;  %v42_v46 = vld [vmem:[%s2603_s0 + $0x80] sm:$0xff]  ;;  %v61_v47 = vld [vmem:[%s2603_s0 + $0x118] sm:$0xff]  ;;  %v43_v49 = vld [vmem:[%s2603_s0 + $0x88] sm:$0xff] }
  0x10   :  { %1634 = vmatmul.mubr.msk.f32.gmra.mrb[4].mxu0 %vm73_vm1, %v31_v13  ;;  %1664 = vmatmul.mubr.msk.f32.gmra.mrb[4].mxu1 %vm73_vm1, %v51_v15  ;;  %v62_v48 = vld [vmem:[%s2603_s0 + $0x120] sm:$0xff]  ;;  %v44_v50 = vld [vmem:[%s2603_s0 + $0x90] sm:$0xff]  ;;  %v63_v51 = vld [vmem:[%s2603_s0 + $0x128] sm:$0xff] }
  0x11   :  { %1636 = vmatprep.mubr.msk.f32.mxu0 %vm73_vm1, %v32_v14  ;;  %1666 = vmatprep.mubr.msk.f32.mxu1 %vm73_vm1, %v52_v20  ;;  %v45_v52 = vld [vmem:[%s2603_s0 + $0x98] sm:$0xff]  ;;  %v908_v53 = vld [vmem:[%s2605_s5] sm:$0xff]  ;;  %v909_v54 = vld [vmem:[%s2605_s5 + $0x8] sm:$0xff] }
  0x12   :  { %1845 = vmatprep.subr.bf16.mxu1 %v1844_v29  ;;  %v910_v55 = vld [vmem:[%s2605_s5 + $0x10] sm:$0xff]  ;;  %v1852_v56 = vpack.c.bf16 %v909_v54, %v908_v53  ;;  %v911_v57 = vld [vmem:[%s2605_s5 + $0x18] sm:$0xff]  ;;  %v912_v59 = vld [vmem:[%s2605_s5 + $0x20] sm:$0xff] }
  0x13   :  { %1847 = vmatpush3.bf16.msra.mxu1 %v1844_v29  ;;  %v1856_v58 = vpack.c.bf16 %v911_v57, %v910_v55  ;;  %v913_v60 = vld [vmem:[%s2605_s5 + $0x28] sm:$0xff]  ;;  %v914_v62 = vld [vmem:[%s2605_s5 + $0x30] sm:$0xff]  ;;  %v915_v63 = vld [vmem:[%s2605_s5 + $0x38] sm:$0xff] }
  0x14   :  { %1637 = vmatmul.mubr.msk.f32.gmra.mrb[6].mxu0 %vm73_vm1, %v33_v23  ;;  %1667 = vmatmul.mubr.msk.f32.gmra.mrb[6].mxu1 %vm73_vm1, %v53_v27  ;;  %v1860_v61 = vpack.c.bf16 %v913_v60, %v912_v59  ;;  %v1864_v0 = vpack.c.bf16 %v915_v63, %v914_v62  ;;  %v2197_v1 = vld [vmem:[%s2606_s2] ss:$0 sm:$0xff] }
  0x15   :  { %1639 = vmatprep.mubr.msk.f32.mxu0 %vm73_vm1, %v34_v26  ;;  %1669 = vmatprep.mubr.msk.f32.mxu1 %vm73_vm1, %v54_v28 }
  0x16   :  { %1849 = vmatprep.subr.bf16.mxu1 %v1848_v36  ;;  %1853 = vmatprep.subr.bf16.mxu0 %v1852_v56 }
  0x17   :  { %1851 = vmatpush3.bf16.msra.mxu1 %v1848_v36  ;;  %1855 = vmatpush3.bf16.msra.mxu0 %v1852_v56 }
  0x18   :  { %1640 = vmatmul.mubr.msk.f32.gmra.mrb[8].mxu0 %vm73_vm1, %v35_v30  ;;  %1670 = vmatmul.mubr.msk.f32.gmra.mrb[8].mxu1 %vm73_vm1, %v55_v34 }
  0x19   :  { %1642 = vmatprep.mubr.msk.f32.mxu0 %vm73_vm1, %v36_v33  ;;  %1672 = vmatprep.mubr.msk.f32.mxu1 %vm73_vm1, %v56_v35 }
  0x1a   :  { %1857 = vmatprep.subr.bf16.mxu0 %v1856_v58 }
  0x1b   :  { %1859 = vmatpush3.bf16.msra.mxu0 %v1856_v58 }
  0x1c   :  { %1643 = vmatmul.mubr.msk.f32.gmra.mrb[10].mxu0 %vm73_vm1, %v37_v37  ;;  %1673 = vmatmul.mubr.msk.f32.gmra.mrb[10].mxu1 %vm73_vm1, %v57_v39 }
  0x1d   :  { %1645 = vmatprep.mubr.msk.f32.mxu0 %vm73_vm1, %v38_v38  ;;  %1675 = vmatprep.mubr.msk.f32.mxu1 %vm73_vm1, %v58_v40 }
  0x1e   :  { %1861 = vmatprep.subr.bf16.mxu0 %v1860_v61 }
  0x1f   :  { %1863 = vmatpush3.bf16.msra.mxu0 %v1860_v61 }
  0x20   :  { %1646 = vmatmul.mubr.msk.f32.gmra.mrb[12].mxu0 %vm73_vm1, %v39_v41  ;;  %1676 = vmatmul.mubr.msk.f32.gmra.mrb[12].mxu1 %vm73_vm1, %v59_v43 }
  0x21   :  { %1648 = vmatprep.mubr.msk.f32.mxu0 %vm73_vm1, %v40_v42  ;;  %1678 = vmatprep.mubr.msk.f32.mxu1 %vm73_vm1, %v60_v44 }
  0x22   :  { %1865 = vmatprep.subr.bf16.mxu0 %v1864_v0 }
  0x23   :  { %1867 = vmatpush3.bf16.msra.mxu0 %v1864_v0 }
  0x24   :  { %1649 = vmatmul.mubr.msk.f32.gmra.mrb[14].mxu0 %vm73_vm1, %v41_v45  ;;  %1679 = vmatmul.mubr.msk.f32.gmra.mrb[14].mxu1 %vm73_vm1, %v61_v47 }
  0x25   :  { %1651 = vmatprep.mubr.msk.f32.mxu0 %vm73_vm1, %v42_v46  ;;  %1681 = vmatprep.mubr.msk.f32.mxu1 %vm73_vm1, %v62_v48 }
  0x28   :  { %1652 = vmatmul.mubr.msk.f32.gmra.mrb[16].mxu0 %vm73_vm1, %v43_v49  ;;  %1682 = vmatmul.mubr.msk.f32.gmra.mrb[16].mxu1 %vm73_vm1, %v63_v51 }
  0x29   :  { %1654 = vmatprep.mubr.msk.f32.mxu0 %vm73_vm1, %v44_v50 }
  0x2c   :  { %1655 = vmatmul.mubr.msk.f32.gmra.mrb[18].mxu0 %vm73_vm1, %v45_v52 }
  0xdb   :  { %v1629_v2 = vpop.f32.mrb[0].mxu0  ;;  %v2201_v6 = vpop.f32.mrb[0].mxu1 }
  0xdc   :  { %v264_v3 = vadd.f32 %v1629_v2, %v2197_v1  ;;  %v258_v4 = vpop.f32.mrb[1].mxu0  ;;  %v2203_v7 = vpop.f32.mrb[1].mxu1 }
  0xdd   :  { %v259_v5 = vadd.f32 %v2197_v1, %v258_v4 }
  0xde   :  { %v448_v10 = vmax.f32 %v264_v3, 0.0 }
  0xdf   :  { %v447_v8 = vmax.f32 %v259_v5, 0.0  ;;  %v1632_v9 = vpop.f32.mrb[2].mxu0  ;;  %v2208_v14 = vpop.f32.mrb[2].mxu1 }
  0xe0   :  { %v274_v11 = vadd.f32 %v1632_v9, %v2197_v1  ;;  %v268_v12 = vpop.f32.mrb[3].mxu0  ;;  %v2211_v15 = vpop.f32.mrb[3].mxu1 }
  0xe1   :  { %v269_v13 = vadd.f32 %v2197_v1, %v268_v12  ;;  %1700 = vmatprep.mubr.msk.f32.mxu1 %vm500_vm4, %v447_v8 }
  0xe2   :  { %1701 = vmatmul.mubr.msk.f32.vlgmr.msra.gmra.mrb[18].mxu1 %vm500_vm4, %v448_v10  ;;  %v450_v18 = vmax.f32 %v274_v11, 0.0 }
  0xe3   :  { %v449_v16 = vmax.f32 %v269_v13, 0.0  ;;  %v1635_v17 = vpop.f32.mrb[4].mxu0  ;;  %v2216_v22 = vpop.f32.mrb[4].mxu1 }
  0xe4   :  { %v284_v19 = vadd.f32 %v1635_v17, %v2197_v1  ;;  %v278_v20 = vpop.f32.mrb[5].mxu0  ;;  %v2219_v23 = vpop.f32.mrb[5].mxu1 }
  0xe5   :  { %v279_v21 = vadd.f32 %v2197_v1, %v278_v20  ;;  %1703 = vmatprep.mubr.msk.f32.mxu1 %vm500_vm4, %v449_v16 }
  0xe6   :  { %1704 = vmatmul.mubr.msk.f32.gmra.mrb[20].mxu1 %vm500_vm4, %v450_v18  ;;  %v452_v26 = vmax.f32 %v284_v19, 0.0  ;;  %v359_v19 = vadd.f32 %v2197_v1, %v2203_v7  ;;  %v364_v7 = vadd.f32 %v2201_v6, %v2197_v1 }
  0xe7   :  { %v451_v24 = vmax.f32 %v279_v21, 0.0  ;;  %v1638_v25 = vpop.f32.mrb[6].mxu0  ;;  %v2224_v30 = vpop.f32.mrb[6].mxu1 }
  0xe8   :  { %v294_v27 = vadd.f32 %v1638_v25, %v2197_v1  ;;  %v288_v28 = vpop.f32.mrb[7].mxu0  ;;  %v2227_v31 = vpop.f32.mrb[7].mxu1 }
  0xe9   :  { %v289_v29 = vadd.f32 %v2197_v1, %v288_v28  ;;  %1706 = vmatprep.mubr.msk.f32.mxu1 %vm500_vm4, %v451_v24  ;;  %v467_v28 = vmax.f32 %v359_v19, 0.0  ;;  %v389_v6 = vadd.f32 %v2197_v1, %v2227_v31 }
  0xea   :  { %1707 = vmatmul.mubr.msk.f32.gmra.mrb[22].mxu1 %vm500_vm4, %v452_v26  ;;  %v454_v34 = vmax.f32 %v294_v27, 0.0 }
  0xeb   :  { %v453_v32 = vmax.f32 %v289_v29, 0.0  ;;  %v1641_v33 = vpop.f32.mrb[8].mxu0  ;;  %v2232_v38 = vpop.f32.mrb[8].mxu1  ;;  %v369_v29 = vadd.f32 %v2197_v1, %v2211_v15 }
  0xec   :  { %v304_v35 = vadd.f32 %v1641_v33, %v2197_v1  ;;  %v298_v36 = vpop.f32.mrb[9].mxu0  ;;  %v2235_v39 = vpop.f32.mrb[9].mxu1 }
  0xed   :  { %v299_v37 = vadd.f32 %v2197_v1, %v298_v36  ;;  %1709 = vmatprep.mubr.msk.f32.mxu1 %vm500_vm4, %v453_v32  ;;  %v469_v33 = vmax.f32 %v369_v29, 0.0  ;;  %v374_v36 = vadd.f32 %v2208_v14, %v2197_v1  ;;  %v399_v14 = vadd.f32 %v2197_v1, %v2235_v39 }
  0xee   :  { %1710 = vmatmul.mubr.msk.f32.gmra.mrb[24].mxu1 %vm500_vm4, %v454_v34  ;;  %v456_v42 = vmax.f32 %v304_v35, 0.0  ;;  %v379_v34 = vadd.f32 %v2197_v1, %v2219_v23  ;;  %v468_v35 = vmax.f32 %v364_v7, 0.0 }
  0xef   :  { %v455_v40 = vmax.f32 %v299_v37, 0.0  ;;  %v1644_v41 = vpop.f32.mrb[10].mxu0  ;;  %v2240_v46 = vpop.f32.mrb[10].mxu1  ;;  %v470_v37 = vmax.f32 %v374_v36, 0.0 }
  0xf0   :  { %v314_v43 = vadd.f32 %v1644_v41, %v2197_v1  ;;  %v308_v44 = vpop.f32.mrb[11].mxu0  ;;  %v2243_v47 = vpop.f32.mrb[11].mxu1  ;;  %v471_v15 = vmax.f32 %v379_v34, 0.0  ;;  %v473_v41 = vmax.f32 %v389_v6, 0.0 }
  0xf1   :  { %v309_v45 = vadd.f32 %v2197_v1, %v308_v44  ;;  %1712 = vmatprep.mubr.msk.f32.mxu1 %vm500_vm4, %v455_v40  ;;  %v384_v40 = vadd.f32 %v2216_v22, %v2197_v1  ;;  %v409_v22 = vadd.f32 %v2197_v1, %v2243_v47  ;;  %v404_v44 = vadd.f32 %v2232_v38, %v2197_v1 }
  0xf2   :  { %1713 = vmatmul.mubr.msk.f32.gmra.mrb[26].mxu1 %vm500_vm4, %v456_v42  ;;  %v458_v50 = vmax.f32 %v314_v43, 0.0  ;;  %v394_v42 = vadd.f32 %v2224_v30, %v2197_v1  ;;  %v475_v43 = vmax.f32 %v399_v14, 0.0 }
  0xf3   :  { %v457_v48 = vmax.f32 %v309_v45, 0.0  ;;  %v1647_v49 = vpop.f32.mrb[12].mxu0  ;;  %v1677_v54 = vpop.f32.mrb[12].mxu1  ;;  %v472_v23 = vmax.f32 %v384_v40, 0.0  ;;  %v477_v45 = vmax.f32 %v409_v22, 0.0  ;;  %v476_v39 = vmax.f32 %v404_v44, 0.0 }
  0xf4   :  { %v324_v51 = vadd.f32 %v1647_v49, %v2197_v1  ;;  %v318_v52 = vpop.f32.mrb[13].mxu0  ;;  %v2250_v55 = vadd.f32 %v1677_v54, %v2197_v1  ;;  %v2252_v56 = vpop.f32.mrb[13].mxu1  ;;  %v474_v31 = vmax.f32 %v394_v42, 0.0 }
  0xf5   :  { %v319_v53 = vadd.f32 %v2197_v1, %v318_v52  ;;  %1715 = vmatprep.mubr.msk.f32.mxu1 %vm500_vm4, %v457_v48  ;;  %v419_v30 = vadd.f32 %v2197_v1, %v2252_v56  ;;  %v414_v48 = vadd.f32 %v2240_v46, %v2197_v1  ;;  %v2329_v52 = vld [vmem:[%s2607_s4] ss:$0 sm:$0xff] }
  0xf6   :  { %1716 = vmatmul.mubr.msk.f32.gmra.mrb[28].mxu1 %vm500_vm4, %v458_v50  ;;  %v460_v59 = vmax.f32 %v324_v51, 0.0  ;;  %v480_v50 = vmax.f32 %v2250_v55, 0.0 }
  0xf7   :  { %v459_v57 = vmax.f32 %v319_v53, 0.0  ;;  %v1650_v58 = vpop.f32.mrb[14].mxu0  ;;  %v1680_v63 = vpop.f32.mrb[14].mxu1  ;;  %v479_v49 = vmax.f32 %v419_v30, 0.0  ;;  %v478_v47 = vmax.f32 %v414_v48, 0.0 }
  0xf8   :  { %v334_v60 = vadd.f32 %v1650_v58, %v2197_v1  ;;  %v328_v61 = vpop.f32.mrb[15].mxu0  ;;  %v2259_v0 = vadd.f32 %v1680_v63, %v2197_v1  ;;  %v428_v2 = vpop.f32.mrb[15].mxu1 }
  0xf9   :  { %v329_v62 = vadd.f32 %v2197_v1, %v328_v61  ;;  %1718 = vmatprep.mubr.msk.f32.mxu1 %vm500_vm4, %v459_v57  ;;  %v2262_v5 = vadd.f32 %v2197_v1, %v428_v2 }
  0xfa   :  { %1719 = vmatmul.mubr.msk.f32.gmra.mrb[30].mxu1 %vm500_vm4, %v460_v59  ;;  %v462_v8 = vmax.f32 %v334_v60, 0.0 }
  0xfb   :  { %v461_v3 = vmax.f32 %v329_v62, 0.0  ;;  %v1653_v4 = vpop.f32.mrb[16].mxu0  ;;  %v1683_v12 = vpop.f32.mrb[16].mxu1  ;;  %v481_v38 = vmax.f32 %v2262_v5, 0.0 }
  0xfc   :  { %v344_v9 = vadd.f32 %v1653_v4, %v2197_v1  ;;  %v338_v10 = vpop.f32.mrb[17].mxu0  ;;  %v2269_v13 = vadd.f32 %v1683_v12, %v2197_v1  ;;  %v438_v16 = vpop.f32.mrb[17].mxu1 }
  0xfd   :  { %v339_v11 = vadd.f32 %v2197_v1, %v338_v10  ;;  %1721 = vmatprep.mubr.msk.f32.mxu1 %vm500_vm4, %v461_v3  ;;  %v439_v20 = vadd.f32 %v2197_v1, %v438_v16 }
  0xfe   :  { %1722 = vmatmul.mubr.msk.f32.gmra.mrb[32].mxu1 %vm500_vm4, %v462_v8  ;;  %v464_v21 = vmax.f32 %v344_v9, 0.0  ;;  %v484_v46 = vmax.f32 %v2269_v13, 0.0 }
  0xff   :  { %v463_v17 = vmax.f32 %v339_v11, 0.0  ;;  %v1656_v18 = vpop.f32.mrb[18].mxu0  ;;  %v483_v51 = vmax.f32 %v439_v20, 0.0 }
 0x100   :  { %v354_v24 = vadd.f32 %v1656_v18, %v2197_v1  ;;  %v348_v25 = vpop.f32.mrb[19].mxu0 }
 0x101   :  { %v349_v26 = vadd.f32 %v2197_v1, %v348_v25  ;;  %1724 = vmatprep.mubr.msk.f32.mxu1 %vm500_vm4, %v463_v17  ;;  %v482_v1 = vmax.f32 %v2259_v0, 0.0 }
 0x102   :  { %1725 = vmatmul.mubr.msk.f32.gmra.mrb[34].mxu1 %vm500_vm4, %v464_v21  ;;  %v466_v32 = vmax.f32 %v354_v24, 0.0 }
 0x103   :  { %v465_v27 = vmax.f32 %v349_v26, 0.0 }
 0x105   :  { %1727 = vmatprep.mubr.msk.f32.mxu1 %vm500_vm4, %v465_v27 }
 0x106   :  { %1728 = vmatmul.mubr.msk.f32.gmra.mrb[36].mxu1 %vm500_vm4, %v466_v32 }
 0x107   :  { %1730 = vmatprep.mubr.msk.f32.mxu1 %vm500_vm4, %v467_v28 }
 0x10a   :  { %1731 = vmatmul.mubr.msk.f32.gmra.mrb[38].mxu1 %vm500_vm4, %v468_v35 }
 0x10b   :  { %1733 = vmatprep.mubr.msk.f32.mxu1 %vm500_vm4, %v469_v33 }
 0x10e   :  { %1734 = vmatmul.mubr.msk.f32.gmra.mrb[40].mxu1 %vm500_vm4, %v470_v37 }
 0x10f   :  { %1736 = vmatprep.mubr.msk.f32.mxu1 %vm500_vm4, %v471_v15 }
 0x112   :  { %1737 = vmatmul.mubr.msk.f32.gmra.mrb[42].mxu1 %vm500_vm4, %v472_v23 }
 0x113   :  { %1739 = vmatprep.mubr.msk.f32.mxu1 %vm500_vm4, %v473_v41 }
 0x116   :  { %1740 = vmatmul.mubr.msk.f32.gmra.mrb[44].mxu1 %vm500_vm4, %v474_v31 }
 0x117   :  { %1742 = vmatprep.mubr.msk.f32.mxu1 %vm500_vm4, %v475_v43 }
 0x11a   :  { %1743 = vmatmul.mubr.msk.f32.gmra.mrb[46].mxu1 %vm500_vm4, %v476_v39 }
 0x11b   :  { %1745 = vmatprep.mubr.msk.f32.mxu1 %vm500_vm4, %v477_v45 }
 0x11e   :  { %1746 = vmatmul.mubr.msk.f32.gmra.mrb[48].mxu1 %vm500_vm4, %v478_v47 }
 0x11f   :  { %1748 = vmatprep.mubr.msk.f32.mxu1 %vm500_vm4, %v479_v49 }
 0x122   :  { %1749 = vmatmul.mubr.msk.f32.gmra.mrb[50].mxu1 %vm500_vm4, %v480_v50 }
 0x123   :  { %1751 = vmatprep.mubr.msk.f32.mxu1 %vm500_vm4, %v481_v38 }
 0x126   :  { %1752 = vmatmul.mubr.msk.f32.gmra.mrb[52].mxu1 %vm500_vm4, %v482_v1 }
 0x127   :  { %1754 = vmatprep.mubr.msk.f32.mxu1 %vm500_vm4, %v483_v51 }
 0x12a   :  { %1755 = vmatmul.mubr.msk.f32.gmra.mrb[54].mxu1 %vm500_vm4, %v484_v46 }
 0x1b5   :  { %v1702_v53 = vpop.f32.mrb[18].mxu1 }
 0x1b6   :  { %v687_v54 = vadd.f32 %v1702_v53, %v2329_v52  ;;  %v681_v55 = vpop.f32.mrb[19].mxu1 }
 0x1b7   :  { %v682_v56 = vadd.f32 %v2329_v52, %v681_v55 }
 0x1b8   :  { %v871_v59 = vmax.f32 %v687_v54, 0.0 }
 0x1b9   :  { %v870_v57 = vmax.f32 %v682_v56, 0.0  ;;  %v1705_v58 = vpop.f32.mrb[20].mxu1 }
 0x1ba   :  { %v697_v60 = vadd.f32 %v1705_v58, %v2329_v52  ;;  %v691_v61 = vpop.f32.mrb[21].mxu1 }
 0x1bb   :  { %v692_v62 = vadd.f32 %v2329_v52, %v691_v61  ;;  %1773 = vmatprep.mubr.msk.f32.mxu0 %vm500_vm4, %v870_v57 }
 0x1bc   :  { %1774 = vmatmul.mubr.msk.f32.vlgmr.msra.gmra.mrb[20].mxu0 %vm500_vm4, %v871_v59  ;;  %v873_v2 = vmax.f32 %v697_v60, 0.0 }
 0x1bd   :  { %v872_v63 = vmax.f32 %v692_v62, 0.0  ;;  %v1708_v0 = vpop.f32.mrb[22].mxu1 }
 0x1be   :  { %v707_v3 = vadd.f32 %v1708_v0, %v2329_v52  ;;  %v701_v4 = vpop.f32.mrb[23].mxu1 }
 0x1bf   :  { %v702_v5 = vadd.f32 %v2329_v52, %v701_v4  ;;  %1776 = vmatprep.mubr.msk.f32.mxu0 %vm500_vm4, %v872_v63 }
 0x1c0   :  { %1777 = vmatmul.mubr.msk.f32.gmra.mrb[22].mxu0 %vm500_vm4, %v873_v2  ;;  %v875_v10 = vmax.f32 %v707_v3, 0.0 }
 0x1c1   :  { %v874_v8 = vmax.f32 %v702_v5, 0.0  ;;  %v1711_v9 = vpop.f32.mrb[24].mxu1 }
 0x1c2   :  { %v717_v11 = vadd.f32 %v1711_v9, %v2329_v52  ;;  %v711_v12 = vpop.f32.mrb[25].mxu1 }
 0x1c3   :  { %v712_v13 = vadd.f32 %v2329_v52, %v711_v12  ;;  %1779 = vmatprep.mubr.msk.f32.mxu0 %vm500_vm4, %v874_v8 }
 0x1c4   :  { %1780 = vmatmul.mubr.msk.f32.gmra.mrb[24].mxu0 %vm500_vm4, %v875_v10  ;;  %v877_v18 = vmax.f32 %v717_v11, 0.0 }
 0x1c5   :  { %v876_v16 = vmax.f32 %v712_v13, 0.0  ;;  %v1714_v17 = vpop.f32.mrb[26].mxu1 }
 0x1c6   :  { %v727_v19 = vadd.f32 %v1714_v17, %v2329_v52  ;;  %v721_v20 = vpop.f32.mrb[27].mxu1 }
 0x1c7   :  { %v722_v21 = vadd.f32 %v2329_v52, %v721_v20  ;;  %1782 = vmatprep.mubr.msk.f32.mxu0 %vm500_vm4, %v876_v16 }
 0x1c8   :  { %1783 = vmatmul.mubr.msk.f32.gmra.mrb[26].mxu0 %vm500_vm4, %v877_v18  ;;  %v879_v26 = vmax.f32 %v727_v19, 0.0 }
 0x1c9   :  { %v878_v24 = vmax.f32 %v722_v21, 0.0  ;;  %v1717_v25 = vpop.f32.mrb[28].mxu1 }
 0x1ca   :  { %v737_v27 = vadd.f32 %v1717_v25, %v2329_v52  ;;  %v731_v28 = vpop.f32.mrb[29].mxu1 }
 0x1cb   :  { %v732_v29 = vadd.f32 %v2329_v52, %v731_v28  ;;  %1785 = vmatprep.mubr.msk.f32.mxu0 %vm500_vm4, %v878_v24 }
 0x1cc   :  { %1786 = vmatmul.mubr.msk.f32.gmra.mrb[28].mxu0 %vm500_vm4, %v879_v26  ;;  %v881_v33 = vmax.f32 %v737_v27, 0.0 }
 0x1cd   :  { %v880_v32 = vmax.f32 %v732_v29, 0.0  ;;  %v1720_v7 = vpop.f32.mrb[30].mxu1 }
 0x1ce   :  { %v747_v34 = vadd.f32 %v1720_v7, %v2329_v52  ;;  %v741_v35 = vpop.f32.mrb[31].mxu1 }
 0x1cf   :  { %v742_v36 = vadd.f32 %v2329_v52, %v741_v35  ;;  %1788 = vmatprep.mubr.msk.f32.mxu0 %vm500_vm4, %v880_v32 }
 0x1d0   :  { %1789 = vmatmul.mubr.msk.f32.gmra.mrb[30].mxu0 %vm500_vm4, %v881_v33  ;;  %v883_v37 = vmax.f32 %v747_v34, 0.0 }
 0x1d1   :  { %v882_v15 = vmax.f32 %v742_v36, 0.0  ;;  %v1723_v6 = vpop.f32.mrb[32].mxu1 }
 0x1d2   :  { %v757_v40 = vadd.f32 %v1723_v6, %v2329_v52  ;;  %v751_v41 = vpop.f32.mrb[33].mxu1 }
 0x1d3   :  { %v752_v14 = vadd.f32 %v2329_v52, %v751_v41  ;;  %1791 = vmatprep.mubr.msk.f32.mxu0 %vm500_vm4, %v882_v15 }
 0x1d4   :  { %1792 = vmatmul.mubr.msk.f32.gmra.mrb[32].mxu0 %vm500_vm4, %v883_v37  ;;  %v885_v43 = vmax.f32 %v757_v40, 0.0 }
 0x1d5   :  { %v884_v23 = vmax.f32 %v752_v14, 0.0  ;;  %v1726_v42 = vpop.f32.mrb[34].mxu1 }
 0x1d6   :  { %v767_v22 = vadd.f32 %v1726_v42, %v2329_v52  ;;  %v761_v31 = vpop.f32.mrb[35].mxu1 }
 0x1d7   :  { %v762_v44 = vadd.f32 %v2329_v52, %v761_v31  ;;  %1794 = vmatprep.mubr.msk.f32.mxu0 %vm500_vm4, %v884_v23 }
 0x1d8   :  { %1795 = vmatmul.mubr.msk.f32.gmra.mrb[34].mxu0 %vm500_vm4, %v885_v43  ;;  %v887_v39 = vmax.f32 %v767_v22, 0.0 }
 0x1d9   :  { %v886_v45 = vmax.f32 %v762_v44, 0.0  ;;  %v1729_v30 = vpop.f32.mrb[36].mxu1  ;;  %v2410_v44 = vld [vmem:[%s2608_s6] ss:$0 sm:$0xff] }
 0x1da   :  { %v777_v48 = vadd.f32 %v1729_v30, %v2329_v52  ;;  %v771_v49 = vpop.f32.mrb[37].mxu1 }
 0x1db   :  { %v772_v47 = vadd.f32 %v2329_v52, %v771_v49  ;;  %1797 = vmatprep.mubr.msk.f32.mxu0 %vm500_vm4, %v886_v45 }
 0x1dc   :  { %1798 = vmatmul.mubr.msk.f32.gmra.mrb[36].mxu0 %vm500_vm4, %v887_v39  ;;  %v889_v51 = vmax.f32 %v777_v48, 0.0 }
 0x1dd   :  { %v888_v38 = vmax.f32 %v772_v47, 0.0  ;;  %v1732_v50 = vpop.f32.mrb[38].mxu1 }
 0x1de   :  { %v787_v1 = vadd.f32 %v1732_v50, %v2329_v52  ;;  %v781_v46 = vpop.f32.mrb[39].mxu1 }
 0x1df   :  { %v782_v53 = vadd.f32 %v2329_v52, %v781_v46  ;;  %1800 = vmatprep.mubr.msk.f32.mxu0 %vm500_vm4, %v888_v38 }
 0x1e0   :  { %1801 = vmatmul.mubr.msk.f32.gmra.mrb[38].mxu0 %vm500_vm4, %v889_v51  ;;  %v891_v56 = vmax.f32 %v787_v1, 0.0 }
 0x1e1   :  { %v890_v54 = vmax.f32 %v782_v53, 0.0  ;;  %v1735_v55 = vpop.f32.mrb[40].mxu1 }
 0x1e2   :  { %v797_v57 = vadd.f32 %v1735_v55, %v2329_v52  ;;  %v791_v58 = vpop.f32.mrb[41].mxu1 }
 0x1e3   :  { %v792_v59 = vadd.f32 %v2329_v52, %v791_v58  ;;  %1803 = vmatprep.mubr.msk.f32.mxu0 %vm500_vm4, %v890_v54 }
 0x1e4   :  { %1804 = vmatmul.mubr.msk.f32.gmra.mrb[40].mxu0 %vm500_vm4, %v891_v56  ;;  %v893_v62 = vmax.f32 %v797_v57, 0.0 }
 0x1e5   :  { %v892_v60 = vmax.f32 %v792_v59, 0.0  ;;  %v1738_v61 = vpop.f32.mrb[42].mxu1 }
 0x1e6   :  { %v807_v63 = vadd.f32 %v1738_v61, %v2329_v52  ;;  %v801_v0 = vpop.f32.mrb[43].mxu1 }
 0x1e7   :  { %v802_v2 = vadd.f32 %v2329_v52, %v801_v0  ;;  %1806 = vmatprep.mubr.msk.f32.mxu0 %vm500_vm4, %v892_v60 }
 0x1e8   :  { %1807 = vmatmul.mubr.msk.f32.gmra.mrb[42].mxu0 %vm500_vm4, %v893_v62  ;;  %v895_v5 = vmax.f32 %v807_v63, 0.0 }
 0x1e9   :  { %v894_v3 = vmax.f32 %v802_v2, 0.0  ;;  %v1741_v4 = vpop.f32.mrb[44].mxu1 }
 0x1ea   :  { %v817_v8 = vadd.f32 %v1741_v4, %v2329_v52  ;;  %v811_v9 = vpop.f32.mrb[45].mxu1 }
 0x1eb   :  { %v812_v10 = vadd.f32 %v2329_v52, %v811_v9  ;;  %1809 = vmatprep.mubr.msk.f32.mxu0 %vm500_vm4, %v894_v3 }
 0x1ec   :  { %1810 = vmatmul.mubr.msk.f32.gmra.mrb[44].mxu0 %vm500_vm4, %v895_v5  ;;  %v897_v13 = vmax.f32 %v817_v8, 0.0 }
 0x1ed   :  { %v896_v11 = vmax.f32 %v812_v10, 0.0  ;;  %v1744_v12 = vpop.f32.mrb[46].mxu1 }
 0x1ee   :  { %v827_v16 = vadd.f32 %v1744_v12, %v2329_v52  ;;  %v821_v17 = vpop.f32.mrb[47].mxu1 }
 0x1ef   :  { %v822_v18 = vadd.f32 %v2329_v52, %v821_v17  ;;  %1812 = vmatprep.mubr.msk.f32.mxu0 %vm500_vm4, %v896_v11 }
 0x1f0   :  { %1813 = vmatmul.mubr.msk.f32.gmra.mrb[46].mxu0 %vm500_vm4, %v897_v13  ;;  %v899_v21 = vmax.f32 %v827_v16, 0.0 }
 0x1f1   :  { %v898_v19 = vmax.f32 %v822_v18, 0.0  ;;  %v1747_v20 = vpop.f32.mrb[48].mxu1 }
 0x1f2   :  { %v837_v24 = vadd.f32 %v1747_v20, %v2329_v52  ;;  %v831_v25 = vpop.f32.mrb[49].mxu1 }
 0x1f3   :  { %v832_v26 = vadd.f32 %v2329_v52, %v831_v25  ;;  %1815 = vmatprep.mubr.msk.f32.mxu0 %vm500_vm4, %v898_v19 }
 0x1f4   :  { %1816 = vmatmul.mubr.msk.f32.gmra.mrb[48].mxu0 %vm500_vm4, %v899_v21  ;;  %v901_v29 = vmax.f32 %v837_v24, 0.0 }
 0x1f5   :  { %v900_v27 = vmax.f32 %v832_v26, 0.0  ;;  %v1750_v28 = vpop.f32.mrb[50].mxu1 }
 0x1f6   :  { %v847_v32 = vadd.f32 %v1750_v28, %v2329_v52  ;;  %v841_v7 = vpop.f32.mrb[51].mxu1 }
 0x1f7   :  { %v842_v33 = vadd.f32 %v2329_v52, %v841_v7  ;;  %1818 = vmatprep.mubr.msk.f32.mxu0 %vm500_vm4, %v900_v27 }
 0x1f8   :  { %1819 = vmatmul.mubr.msk.f32.gmra.mrb[50].mxu0 %vm500_vm4, %v901_v29  ;;  %v903_v36 = vmax.f32 %v847_v32, 0.0 }
 0x1f9   :  { %v902_v34 = vmax.f32 %v842_v33, 0.0  ;;  %v1753_v35 = vpop.f32.mrb[52].mxu1 }
 0x1fa   :  { %v857_v15 = vadd.f32 %v1753_v35, %v2329_v52  ;;  %v851_v6 = vpop.f32.mrb[53].mxu1 }
 0x1fb   :  { %v852_v37 = vadd.f32 %v2329_v52, %v851_v6  ;;  %1821 = vmatprep.mubr.msk.f32.mxu0 %vm500_vm4, %v902_v34 }
 0x1fc   :  { %1822 = vmatmul.mubr.msk.f32.gmra.mrb[52].mxu0 %vm500_vm4, %v903_v36  ;;  %v905_v14 = vmax.f32 %v857_v15, 0.0 }
 0x1fd   :  { %v904_v40 = vmax.f32 %v852_v37, 0.0  ;;  %v1756_v41 = vpop.f32.mrb[54].mxu1 }
 0x1fe   :  { %v867_v23 = vadd.f32 %v1756_v41, %v2329_v52  ;;  %v861_v42 = vpop.f32.mrb[55].mxu1 }
 0x1ff   :  { %v862_v43 = vadd.f32 %v2329_v52, %v861_v42  ;;  %1824 = vmatprep.mubr.msk.f32.mxu0 %vm500_vm4, %v904_v40 }
 0x200   :  { %1825 = vmatmul.mubr.msk.f32.gmra.mrb[54].mxu0 %vm500_vm4, %v905_v14  ;;  %v907_v31 = vmax.f32 %v867_v23, 0.0 }
 0x201   :  { %v906_v22 = vmax.f32 %v862_v43, 0.0 }
 0x203   :  { %1827 = vmatprep.mubr.msk.f32.mxu0 %vm500_vm4, %v906_v22 }
 0x204   :  { %1828 = vmatmul.mubr.msk.f32.gmra.mrb[56].mxu0 %vm500_vm4, %v907_v31 }
 0x28f   :  { %v1775_v45 = vpop.f32.mrb[20].mxu0 }
 0x290   :  { %v1109_v30 = vadd.f32 %v1775_v45, %v2410_v44  ;;  %v1103_v39 = vpop.f32.mrb[21].mxu0 }
 0x291   :  { %v1104_v52 = vadd.f32 %v2410_v44, %v1103_v39 }
 0x292   :  { %1871 = vtanh.f32 %v1109_v30 }
 0x293   :  { %1873 = vtanh.f32 %v1104_v52  ;;  %v1778_v48 = vpop.f32.mrb[22].mxu0 }
 0x294   :  { %v1119_v49 = vadd.f32 %v1778_v48, %v2410_v44  ;;  %v1113_v47 = vpop.f32.mrb[23].mxu0 }
 0x295   :  { %v1114_v38 = vadd.f32 %v2410_v44, %v1113_v47 }
 0x296   :  { %1875 = vtanh.f32 %v1119_v49 }
 0x297   :  { %1877 = vtanh.f32 %v1114_v38  ;;  %v1781_v50 = vpop.f32.mrb[24].mxu0 }
 0x298   :  { %v1129_v51 = vadd.f32 %v1781_v50, %v2410_v44  ;;  %v1123_v1 = vpop.f32.mrb[25].mxu0 }
 0x299   :  { %v1124_v46 = vadd.f32 %v2410_v44, %v1123_v1 }
 0x29a   :  { %1879 = vtanh.f32 %v1129_v51 }
 0x29b   :  { %1881 = vtanh.f32 %v1124_v46  ;;  %v1784_v53 = vpop.f32.mrb[26].mxu0 }
 0x29c   :  { %v1872_v54 = vpop.eup %1871  ;;  %v1139_v55 = vadd.f32 %v1784_v53, %v2410_v44  ;;  %v1133_v56 = vpop.f32.mrb[27].mxu0 }
 0x29d   :  { %v1874_v57 = vpop.eup %1873  ;;  %1332 = vst.msk [vmem:[%s2609_s7 + $0x8] sm:$0xff] %vm1330_vm5, %v1872_v54  ;;  %v1134_v58 = vadd.f32 %v2410_v44, %v1133_v56 }
 0x29e   :  { %1331 = vst.msk [vmem:[%s2609_s7] sm:$0xff] %vm1330_vm5, %v1874_v57  ;;  %1883 = vtanh.f32 %v1139_v55 }
 0x29f   :  { %1885 = vtanh.f32 %v1134_v58  ;;  %v1787_v59 = vpop.f32.mrb[28].mxu0 }
 0x2a0   :  { %v1876_v60 = vpop.eup %1875  ;;  %v1149_v61 = vadd.f32 %v1787_v59, %v2410_v44  ;;  %v1143_v62 = vpop.f32.mrb[29].mxu0 }
 0x2a1   :  { %v1878_v63 = vpop.eup %1877  ;;  %1334 = vst.msk [vmem:[%s2609_s7 + $0x18] sm:$0xff] %vm1330_vm5, %v1876_v60  ;;  %v1144_v0 = vadd.f32 %v2410_v44, %v1143_v62 }
 0x2a2   :  { %1333 = vst.msk [vmem:[%s2609_s7 + $0x10] sm:$0xff] %vm1330_vm5, %v1878_v63  ;;  %1887 = vtanh.f32 %v1149_v61 }
 0x2a3   :  { %1889 = vtanh.f32 %v1144_v0  ;;  %v1790_v2 = vpop.f32.mrb[30].mxu0 }
 0x2a4   :  { %v1880_v3 = vpop.eup %1879  ;;  %v1159_v4 = vadd.f32 %v1790_v2, %v2410_v44  ;;  %v1153_v5 = vpop.f32.mrb[31].mxu0 }
 0x2a5   :  { %v1882_v8 = vpop.eup %1881  ;;  %1336 = vst.msk [vmem:[%s2609_s7 + $0x28] sm:$0xff] %vm1330_vm5, %v1880_v3  ;;  %v1154_v9 = vadd.f32 %v2410_v44, %v1153_v5 }
 0x2a6   :  { %1335 = vst.msk [vmem:[%s2609_s7 + $0x20] sm:$0xff] %vm1330_vm5, %v1882_v8  ;;  %1891 = vtanh.f32 %v1159_v4 }
 0x2a7   :  { %1893 = vtanh.f32 %v1154_v9  ;;  %v1793_v10 = vpop.f32.mrb[32].mxu0 }
 0x2a8   :  { %v1884_v11 = vpop.eup %1883  ;;  %v1169_v12 = vadd.f32 %v1793_v10, %v2410_v44  ;;  %v1163_v13 = vpop.f32.mrb[33].mxu0 }
 0x2a9   :  { %v1886_v16 = vpop.eup %1885  ;;  %1338 = vst.msk [vmem:[%s2609_s7 + $0x38] sm:$0xff] %vm1330_vm5, %v1884_v11  ;;  %v1164_v17 = vadd.f32 %v2410_v44, %v1163_v13 }
 0x2aa   :  { %1337 = vst.msk [vmem:[%s2609_s7 + $0x30] sm:$0xff] %vm1330_vm5, %v1886_v16  ;;  %1895 = vtanh.f32 %v1169_v12 }
 0x2ab   :  { %1897 = vtanh.f32 %v1164_v17  ;;  %v1796_v18 = vpop.f32.mrb[34].mxu0 }
 0x2ac   :  { %v1888_v19 = vpop.eup %1887  ;;  %v1179_v20 = vadd.f32 %v1796_v18, %v2410_v44  ;;  %v1173_v21 = vpop.f32.mrb[35].mxu0 }
 0x2ad   :  { %v1890_v24 = vpop.eup %1889  ;;  %1340 = vst.msk [vmem:[%s2609_s7 + $0x48] sm:$0xff] %vm1330_vm5, %v1888_v19  ;;  %v1174_v25 = vadd.f32 %v2410_v44, %v1173_v21 }
 0x2ae   :  { %1339 = vst.msk [vmem:[%s2609_s7 + $0x40] sm:$0xff] %vm1330_vm5, %v1890_v24  ;;  %1899 = vtanh.f32 %v1179_v20 }
 0x2af   :  { %1901 = vtanh.f32 %v1174_v25  ;;  %v1799_v26 = vpop.f32.mrb[36].mxu0 }
 0x2b0   :  { %v1892_v27 = vpop.eup %1891  ;;  %v1189_v28 = vadd.f32 %v1799_v26, %v2410_v44  ;;  %v1183_v29 = vpop.f32.mrb[37].mxu0 }
 0x2b1   :  { %v1894_v32 = vpop.eup %1893  ;;  %1342 = vst.msk [vmem:[%s2609_s7 + $0x58] sm:$0xff] %vm1330_vm5, %v1892_v27  ;;  %v1184_v7 = vadd.f32 %v2410_v44, %v1183_v29 }
 0x2b2   :  { %1341 = vst.msk [vmem:[%s2609_s7 + $0x50] sm:$0xff] %vm1330_vm5, %v1894_v32  ;;  %1903 = vtanh.f32 %v1189_v28 }
 0x2b3   :  { %1905 = vtanh.f32 %v1184_v7  ;;  %v1802_v33 = vpop.f32.mrb[38].mxu0 }
 0x2b4   :  { %v1896_v34 = vpop.eup %1895  ;;  %v1199_v35 = vadd.f32 %v1802_v33, %v2410_v44  ;;  %v1193_v36 = vpop.f32.mrb[39].mxu0 }
 0x2b5   :  { %v1898_v15 = vpop.eup %1897  ;;  %1344 = vst.msk [vmem:[%s2609_s7 + $0x68] sm:$0xff] %vm1330_vm5, %v1896_v34  ;;  %v1194_v6 = vadd.f32 %v2410_v44, %v1193_v36 }
 0x2b6   :  { %1343 = vst.msk [vmem:[%s2609_s7 + $0x60] sm:$0xff] %vm1330_vm5, %v1898_v15  ;;  %1907 = vtanh.f32 %v1199_v35 }
 0x2b7   :  { %1909 = vtanh.f32 %v1194_v6  ;;  %v1805_v37 = vpop.f32.mrb[40].mxu0 }
 0x2b8   :  { %v1900_v40 = vpop.eup %1899  ;;  %v1209_v41 = vadd.f32 %v1805_v37, %v2410_v44  ;;  %v1203_v14 = vpop.f32.mrb[41].mxu0 }
 0x2b9   :  { %v1902_v23 = vpop.eup %1901  ;;  %1346 = vst.msk [vmem:[%s2609_s7 + $0x78] sm:$0xff] %vm1330_vm5, %v1900_v40  ;;  %v1204_v42 = vadd.f32 %v2410_v44, %v1203_v14 }
 0x2ba   :  { %1345 = vst.msk [vmem:[%s2609_s7 + $0x70] sm:$0xff] %vm1330_vm5, %v1902_v23  ;;  %1911 = vtanh.f32 %v1209_v41 }
 0x2bb   :  { %1913 = vtanh.f32 %v1204_v42  ;;  %v1808_v43 = vpop.f32.mrb[42].mxu0 }
 0x2bc   :  { %v1904_v22 = vpop.eup %1903  ;;  %v1219_v31 = vadd.f32 %v1808_v43, %v2410_v44  ;;  %v1213_v45 = vpop.f32.mrb[43].mxu0 }
 0x2bd   :  { %v1906_v30 = vpop.eup %1905  ;;  %1348 = vst.msk [vmem:[%s2609_s7 + $0x88] sm:$0xff] %vm1330_vm5, %v1904_v22  ;;  %v1214_v39 = vadd.f32 %v2410_v44, %v1213_v45 }
 0x2be   :  { %1347 = vst.msk [vmem:[%s2609_s7 + $0x80] sm:$0xff] %vm1330_vm5, %v1906_v30  ;;  %1915 = vtanh.f32 %v1219_v31 }
 0x2bf   :  { %1917 = vtanh.f32 %v1214_v39  ;;  %v1811_v52 = vpop.f32.mrb[44].mxu0 }
 0x2c0   :  { %v1908_v48 = vpop.eup %1907  ;;  %v1229_v49 = vadd.f32 %v1811_v52, %v2410_v44  ;;  %v1223_v47 = vpop.f32.mrb[45].mxu0 }
 0x2c1   :  { %v1910_v38 = vpop.eup %1909  ;;  %1350 = vst.msk [vmem:[%s2609_s7 + $0x98] sm:$0xff] %vm1330_vm5, %v1908_v48  ;;  %v1224_v50 = vadd.f32 %v2410_v44, %v1223_v47 }
 0x2c2   :  { %1349 = vst.msk [vmem:[%s2609_s7 + $0x90] sm:$0xff] %vm1330_vm5, %v1910_v38  ;;  %1919 = vtanh.f32 %v1229_v49 }
 0x2c3   :  { %1921 = vtanh.f32 %v1224_v50  ;;  %v1814_v51 = vpop.f32.mrb[46].mxu0 }
 0x2c4   :  { %v1912_v1 = vpop.eup %1911  ;;  %v1239_v46 = vadd.f32 %v1814_v51, %v2410_v44  ;;  %v1233_v53 = vpop.f32.mrb[47].mxu0 }
 0x2c5   :  { %v1914_v54 = vpop.eup %1913  ;;  %1352 = vst.msk [vmem:[%s2609_s7 + $0xa8] sm:$0xff] %vm1330_vm5, %v1912_v1  ;;  %v1234_v55 = vadd.f32 %v2410_v44, %v1233_v53 }
 0x2c6   :  { %1351 = vst.msk [vmem:[%s2609_s7 + $0xa0] sm:$0xff] %vm1330_vm5, %v1914_v54  ;;  %1923 = vtanh.f32 %v1239_v46 }
 0x2c7   :  { %1925 = vtanh.f32 %v1234_v55  ;;  %v1817_v56 = vpop.f32.mrb[48].mxu0 }
 0x2c8   :  { %v1916_v57 = vpop.eup %1915  ;;  %v1249_v58 = vadd.f32 %v1817_v56, %v2410_v44  ;;  %v1243_v59 = vpop.f32.mrb[49].mxu0 }
 0x2c9   :  { %v1918_v60 = vpop.eup %1917  ;;  %1354 = vst.msk [vmem:[%s2609_s7 + $0xb8] sm:$0xff] %vm1330_vm5, %v1916_v57  ;;  %v1244_v61 = vadd.f32 %v2410_v44, %v1243_v59 }
 0x2ca   :  { %1353 = vst.msk [vmem:[%s2609_s7 + $0xb0] sm:$0xff] %vm1330_vm5, %v1918_v60  ;;  %1927 = vtanh.f32 %v1249_v58 }
 0x2cb   :  { %1929 = vtanh.f32 %v1244_v61  ;;  %v1820_v62 = vpop.f32.mrb[50].mxu0 }
 0x2cc   :  { %v1920_v63 = vpop.eup %1919  ;;  %v1259_v0 = vadd.f32 %v1820_v62, %v2410_v44  ;;  %v1253_v2 = vpop.f32.mrb[51].mxu0 }
 0x2cd   :  { %v1922_v3 = vpop.eup %1921  ;;  %1356 = vst.msk [vmem:[%s2609_s7 + $0xc8] sm:$0xff] %vm1330_vm5, %v1920_v63  ;;  %v1254_v4 = vadd.f32 %v2410_v44, %v1253_v2 }
 0x2ce   :  { %1355 = vst.msk [vmem:[%s2609_s7 + $0xc0] sm:$0xff] %vm1330_vm5, %v1922_v3  ;;  %1931 = vtanh.f32 %v1259_v0 }
 0x2cf   :  { %1933 = vtanh.f32 %v1254_v4  ;;  %v1823_v5 = vpop.f32.mrb[52].mxu0 }
 0x2d0   :  { %v1924_v8 = vpop.eup %1923  ;;  %v1269_v9 = vadd.f32 %v1823_v5, %v2410_v44  ;;  %v1263_v10 = vpop.f32.mrb[53].mxu0 }
 0x2d1   :  { %v1926_v11 = vpop.eup %1925  ;;  %1358 = vst.msk [vmem:[%s2609_s7 + $0xd8] sm:$0xff] %vm1330_vm5, %v1924_v8  ;;  %v1264_v12 = vadd.f32 %v2410_v44, %v1263_v10 }
 0x2d2   :  { %1357 = vst.msk [vmem:[%s2609_s7 + $0xd0] sm:$0xff] %vm1330_vm5, %v1926_v11  ;;  %1935 = vtanh.f32 %v1269_v9 }
 0x2d3   :  { %1937 = vtanh.f32 %v1264_v12  ;;  %v1826_v13 = vpop.f32.mrb[54].mxu0 }
 0x2d4   :  { %v1928_v16 = vpop.eup %1927  ;;  %v1279_v17 = vadd.f32 %v1826_v13, %v2410_v44  ;;  %v1273_v18 = vpop.f32.mrb[55].mxu0 }
 0x2d5   :  { %v1930_v19 = vpop.eup %1929  ;;  %1360 = vst.msk [vmem:[%s2609_s7 + $0xe8] sm:$0xff] %vm1330_vm5, %v1928_v16  ;;  %v1274_v20 = vadd.f32 %v2410_v44, %v1273_v18 }
 0x2d6   :  { %1359 = vst.msk [vmem:[%s2609_s7 + $0xe0] sm:$0xff] %vm1330_vm5, %v1930_v19  ;;  %1939 = vtanh.f32 %v1279_v17 }
 0x2d7   :  { %1941 = vtanh.f32 %v1274_v20  ;;  %v1829_v21 = vpop.f32.mrb[56].mxu0 }
 0x2d8   :  { %v1932_v24 = vpop.eup %1931  ;;  %v1289_v25 = vadd.f32 %v1829_v21, %v2410_v44  ;;  %v1283_v26 = vpop.f32.mrb[57].mxu0 }
 0x2d9   :  { %v1934_v27 = vpop.eup %1933  ;;  %1362 = vst.msk [vmem:[%s2609_s7 + $0xf8] sm:$0xff] %vm1330_vm5, %v1932_v24  ;;  %v1284_v28 = vadd.f32 %v2410_v44, %v1283_v26 }
 0x2da   :  { %1361 = vst.msk [vmem:[%s2609_s7 + $0xf0] sm:$0xff] %vm1330_vm5, %v1934_v27  ;;  %1943 = vtanh.f32 %v1289_v25 }
 0x2db   :  { %1945 = vtanh.f32 %v1284_v28 }
 0x2dc   :  { %v1936_v29 = vpop.eup %1935 }
 0x2dd   :  { %v1938_v32 = vpop.eup %1937  ;;  %1364 = vst.msk [vmem:[%s2609_s7 + $0x108] sm:$0xff] %vm1330_vm5, %v1936_v29 }
 0x2de   :  { %1363 = vst.msk [vmem:[%s2609_s7 + $0x100] sm:$0xff] %vm1330_vm5, %v1938_v32 }
 0x2e0   :  { %v1940_v44 = vpop.eup %1939 }
 0x2e1   :  { %v1942_v7 = vpop.eup %1941  ;;  %1366 = vst.msk [vmem:[%s2609_s7 + $0x118] sm:$0xff] %vm1330_vm5, %v1940_v44 }
 0x2e2   :  { %1365 = vst.msk [vmem:[%s2609_s7 + $0x110] sm:$0xff] %vm1330_vm5, %v1942_v7 }
 0x2e4   :  { %v1944_v33 = vpop.eup %1943 }
 0x2e5   :  { %v1946_v34 = vpop.eup %1945  ;;  %1368 = vst.msk [vmem:[%s2609_s7 + $0x128] sm:$0xff] %vm1330_vm5, %v1944_v33 }
 0x2e6   :  { %1367 = vst.msk [vmem:[%s2609_s7 + $0x120] sm:$0xff] %vm1330_vm5, %v1946_v34 }

</bundles_post_ra>
